<compile_context>
chip_gen: v7x
topology: tpu7x:2x2x1
jax: 0.10.0
libtpu: 0.0.40
codegen_flags: <defaults>
</compile_context>

<pallas_src>
import jax
import jax.numpy as jnp
from jax.experimental import pallas as pl
from jax.experimental.pallas import tpu as pltpu


def _perm_kernel(s_ref, x_ref, o_ref):
    # s_ref: (1, 1) SMEM scalar holding s / (H*W)
    # x_ref / o_ref: (TM, H*W) lane-dense VMEM tile
    x = x_ref[...]
    # Row sum accumulated in f32 (XLU reduction) without materializing an f32
    # copy of the whole tile.
    row_sum = jnp.sum(x, axis=-1, keepdims=True, dtype=jnp.float32)   # (TM, 1)
    row_scale = (row_sum * s_ref[0, 0]).astype(x.dtype)               # mean * s
    o_ref[...] = x * row_scale                                        # VPU broadcast mul


def _vmem_capacity_bytes():
    try:
        info = pltpu.get_tpu_info()
        cap = getattr(info, "vmem_capacity_bytes", None)
        if cap:
            return int(cap)
    except Exception:
        pass
    return 64 << 20  # conservative (v7x per-TC) fallback


def _choose_tm(rows, hw, itemsize, vmem_cap):
    """Rows per tile: generation-aware target bytes, dtype-packed alignment,
    VMEM budget guard, and >=2 grid steps when possible (v7x megacore)."""
    row_bytes = max(hw * itemsize, 1)
    # 8 sublanes for 32-bit dtypes, 16 rows for 16-bit, 32 for 8-bit packing.
    align = 8 * max(1, 4 // max(itemsize, 1))
    if rows < align:
        return rows  # full-dim block is always tile-legal

    # ~vmem/16 per buffer (4 buffers = in+out double-buffered ~= vmem/4),
    # capped at 8 MiB.
    target_bytes = max(1 << 20, min(8 << 20, vmem_cap // 16))
    tm = max(align, (target_bytes // row_bytes) // align * align)

    # Hard VMEM guard: one tile must not exceed vmem/8.
    # TODO(synk): if even align*row_bytes exceeds the budget (huge H*W), split
    # H*W onto a second 'arbitrary' grid axis with a partial-sum scratch.
    max_tile_bytes = max(vmem_cap // 8, align * row_bytes)
    while tm > align and tm * row_bytes > max_tile_bytes:
        tm -= align

    # Never collapse to a single grid step when we can split: gives v7x's two
    # TensorCores independent work (neutral on single-TC v5e/v6e).
    if tm >= rows and rows >= 2 * align:
        tm = (((rows + 1) // 2) + align - 1) // align * align
    if tm >= rows:
        tm = rows
    return tm


def perm_forward(x, s):
    """x: (N, C, H, W) array; s: scalar parameter (shape (1,))."""
    N, C, H, W = x.shape
    rows = N * C
    hw = H * W
    x_flat = x.reshape(rows, hw)

    vmem_cap = _vmem_capacity_bytes()
    itemsize = x.dtype.itemsize
    tm = _choose_tm(rows, hw, itemsize, vmem_cap)
    num_tiles = -(-rows // tm)  # ceil div; partial last block handled by Pallas

    # Fold s * 1/(H*W) into a single SMEM scalar.
    scale = (jnp.asarray(s, dtype=jnp.float32).reshape(-1)[:1]
             * (1.0 / float(hw))).reshape(1, 1)

    tile_bytes = tm * hw * itemsize
    need = 4 * tile_bytes + (4 << 20)                 # in+out, double-buffered, + slack
    vmem_limit = int(min(max(need, 16 << 20), vmem_cap * 3 // 4))

    out_flat = pl.pallas_call(
        _perm_kernel,
        out_shape=jax.ShapeDtypeStruct((rows, hw), x.dtype),
        grid_spec=pltpu.PrefetchScalarGridSpec(
            num_scalar_prefetch=0,
            grid=(num_tiles,),
            in_specs=[
                pl.BlockSpec(memory_space=pltpu.MemorySpace.SMEM),   # scale (1,1)
                pl.BlockSpec((tm, hw), lambda i: (i, 0)),            # x tile
            ],
            out_specs=pl.BlockSpec((tm, hw), lambda i: (i, 0)),
        ),
        compiler_params=pltpu.CompilerParams(
            dimension_semantics=("parallel",),
            vmem_limit_bytes=vmem_limit),
    )(scale, x_flat)

    return out_flat.reshape(N, C, H, W)


if __name__ == "__main__":
    key = jax.random.PRNGKey(0)
    N, C, H, W = 2, 4, 16, 16
    x = jax.random.normal(key, (N, C, H, W), dtype=jnp.float32)

    # Parameter init matches nn.Parameter(torch.tensor([1.0]))
    s = jnp.array([1.0], dtype=jnp.float32)

    out = perm_forward(x, s)
    out = jax.block_until_ready(out)

    # Reference check (plain JAX)
    ref = x * (jnp.mean(x, axis=(2, 3), keepdims=True) * s[0])
    assert out.shape == (N, C, H, W)
    assert jnp.allclose(out, ref, atol=1e-5, rtol=1e-5)

    print("KERNEL_OK")
</pallas_src>

<mosaic_0001>
module attributes {stable_mosaic.version = 11 : i64} {
  func.func @_perm_kernel(%arg0: i32, %arg1: memref<1x1xf32, #tpu.memory_space<smem>>, %arg2: memref<8x256xf32, #tpu.memory_space<vmem>>, %arg3: memref<8x256xf32, #tpu.memory_space<vmem>>) attributes {dimension_semantics = [#tpu.dimension_semantics<parallel>], iteration_bounds = array<i64: 1>, scalar_prefetch = 0 : i64, scratch_operands = 0 : i64, tpu.core_type = #tpu.core_type<tc>, window_params = [{transform_indices = @transform_0, window_bounds = array<i64: 1, 1>}, {transform_indices = @transform_1, window_bounds = array<i64: 8, 256>}, {transform_indices = @transform_2, window_bounds = array<i64: 8, 256>}]} {
    %c0 = arith.constant 0 : index
    %c0_0 = arith.constant 0 : index
    %0 = vector.load %arg2[%c0, %c0_0] : memref<8x256xf32, #tpu.memory_space<vmem>>, vector<8x256xf32>
    %cst = arith.constant dense<0.000000e+00> : vector<8xf32>
    %1 = vector.multi_reduction <add>, %0, %cst [1] : vector<8x256xf32> to vector<8xf32>
    %2 = vector.shape_cast %1 : vector<8xf32> to vector<8x1xf32>
    %c0_1 = arith.constant 0 : index
    %c0_2 = arith.constant 0 : index
    %3 = memref.load %arg1[%c0_1, %c0_2] : memref<1x1xf32, #tpu.memory_space<smem>>
    %4 = vector.broadcast %3 : f32 to vector<8x1xf32>
    %5 = arith.mulf %2, %4 : vector<8x1xf32>
    %6 = vector.broadcast %5 : vector<8x1xf32> to vector<8x256xf32>
    %7 = arith.mulf %0, %6 : vector<8x256xf32>
    %c0_3 = arith.constant 0 : index
    %c0_4 = arith.constant 0 : index
    %8 = vector.load %arg3[%c0_3, %c0_4] : memref<8x256xf32, #tpu.memory_space<vmem>>, vector<8x256xf32>
    tpu.vector_store %arg3[%c0_3, %c0_4], %7 {strides = array<i32>} : memref<8x256xf32, #tpu.memory_space<vmem>>, vector<8x256xf32>,
    return
  }
  func.func @transform_0(%arg0: i32) -> (i32, i32) {
    %c0_i32 = arith.constant 0 : i32
    %c0_i32_0 = arith.constant 0 : i32
    %c0_i32_1 = arith.constant 0 : i32
    return %c0_i32, %c0_i32_0 : i32, i32
  }
  func.func @transform_1(%arg0: i32) -> (i32, i32) {
    %c0_i32 = arith.constant 0 : i32
    %c0_i32_0 = arith.constant 0 : i32
    return %arg0, %c0_i32 : i32, i32
  }
  func.func @transform_2(%arg0: i32) -> (i32, i32) {
    %c0_i32 = arith.constant 0 : i32
    %c0_i32_0 = arith.constant 0 : i32
    return %arg0, %c0_i32 : i32, i32
  }
}

</mosaic_0001>

<bundles_post_ra>
// kernel: tpu_custom_call.1
= control target key start
LH: loop header
LB: loop body
LE: loop exit
PB: predicated region body
PF: predicated region fallthrough
CT: control target
= control target key end

     0   :  { %8 = vsyncpa [#allocation4], 0  ;;  %s146_s0 = inlined_call_operand.<no memory space> [shape: f32[1,1], index: 0, kind: input, shape index: {}]   ;;  %s147_s1 = inlined_call_operand.hbm [shape: f32[8,256], index: 1, kind: input, shape index: {}]   ;;  %s148_s2 = inlined_call_operand.hbm [shape: f32[8,256], index: 2, kind: output, shape index: {}]  }
   0x1   :  { %9 = vsyncpa [#allocation5], 0  ;;  %s102_s9 = smov [#allocation3]   ;;  %s54_s13 = scalar_lea.hbm %s147_s1, 256 }
   0x2   :  { %s18_s10 = sshll.u32 %s102_s9, 4  ;;  %p55_p0 = scmp.ne.s32.totalorder %s147_s1, %s54_s13  ;;  %s19_s10 = int_to_ptr.vmem [resolvable:$true] %s18_s10 }
   0x3   :  { %p58_p1 = scmp.lt.u32.totalorder %s54_s13, %s147_s1 }
   0x5   :  { %p60_p2 = pnand %p58_p1, %p55_p0 }
   0x7   :  { %63 = shalt.err (!%p60_p2)
}
   0x8   :  { %s64_s18 = scalar_lea.vmem %s19_s10, 256  ;;  %p69_p4 = scmp.lt.s32.totalorder %s19_s10, %s19_s10 }
   0x9   :  { %p65_p3 = scmp.ne.s32.totalorder %s19_s10, %s64_s18  ;;  %p70_p5 = scmp.lt.s32.totalorder %s64_s18, %s64_s18 }
   0xb   :  { %p71_p6 = por %p70_p5, %p69_p4 }
   0xd   :  { %p72_p7 = pnand %p71_p6, %p65_p3 }
   0xf   :  { %75 = shalt.err (!%p72_p7)
}
  0x10   :  { %21 = dma.hbm_to_vmem [thread:$0]  %s147_s1, 256, %s19_s10, [#allocation4]  }
  0x11   :  { %98 = dma.done.wait [#allocation4], 256  }
  0x12   :  { %99 = vsyncadd [#allocation4], 4294967040  ;;  %v25_v0 = vld [vmem:[#allocation3] sm:$0xff]  ;;  %v26_v1 = vld [vmem:[#allocation3 + $0x8] sm:$0xff]  ;;  %v31_v3 = vstv %s146_s0  ;;  %s103_s23 = smov [#allocation6]  }
  0x13   :  { %v27_v2 = vadd.f32 %v26_v1, %v25_v0  ;;  %s43_s24 = sshll.u32 %s103_s23, 4  ;;  %s44_s24 = int_to_ptr.vmem [resolvable:$true] %s43_s24 }
  0x14   :  { %s76_s1 = scalar_lea.vmem %s44_s24, 256  ;;  %p81_p9 = scmp.lt.s32.totalorder %s44_s24, %s44_s24 }
  0x15   :  { %28 = vadd.xlane.f32.xlu0 %v27_v2  ;;  %p77_p8 = scmp.ne.s32.totalorder %s44_s24, %s76_s1  ;;  %p82_p10 = scmp.lt.s32.totalorder %s76_s1, %s76_s1 }
  0x17   :  { %p83_p11 = por %p82_p10, %p81_p9 }
  0x19   :  { %p84_p12 = pnand %p83_p11, %p77_p8 }
  0xa2   :  { %v29_v4 = vpop.xlane.xlu0 %28 }
  0xa3   :  { %v32_v5 = vmul.f32 %v31_v3, %v29_v4 }
  0xa5   :  { %v33_v6 = vmul.f32 %v32_v5, %v25_v0  ;;  %v34_v7 = vmul.f32 %v32_v5, %v26_v1 }
  0xa7   :  { %35 = vst [vmem:[#allocation6] sm:$0xff] %v33_v6  ;;  %36 = vst [vmem:[#allocation6 + $0x8] sm:$0xff] %v34_v7 }
  0xa8   :  { %87 = shalt.err (!%p84_p12)
}
  0xa9   :  { %s88_s0 = scalar_lea.hbm %s148_s2, 256 }
  0xaa   :  { %p89_p13 = scmp.ne.s32.totalorder %s148_s2, %s88_s0  ;;  %p92_p0 = scmp.lt.u32.totalorder %s88_s0, %s148_s2 }
  0xac   :  { %p94_p1 = pnand %p92_p0, %p89_p13 }
  0xae   :  { %97 = shalt.err (!%p94_p1)
}
  0xaf   :  { %46 = dma.vmem_to_hbm [thread:$0]  %s44_s24, 256, %s148_s2, [#allocation5]  }
  0xb0   :  { %100 = dma.done.wait [#allocation5], 256  }
  0xb1   :  { %101 = vsyncadd [#allocation5], 4294967040 }
  0xb2   :  { %50 = vsyncpa [#allocation4], 1 }
  0xb3   :  { %51 = vsyncpa [#allocation5], 1 }

</bundles_post_ra>
